<compile_context>
chip_gen: v6e
topology: v6e:2x2x1
jax: 0.10.0
libtpu: 0.0.40
codegen_flags: <defaults>
</compile_context>

<pallas_src>
import numpy as np
import jax
import jax.numpy as jnp
from jax.experimental import pallas as pl
from jax.experimental.pallas import tpu as pltpu

# ---- hyperparameters: RandomChainNetwork(input_size=128, output_size=8) ----
IN = 128            # input_size
HID = 256           # hidden width of linear1 / linear2
OUT = 8             # output_size
OUT_PAD = 128       # lane-padded output width (sliced back in the wrapper)
BATCH = 2


def _round_up(n, m):
    return ((n + m - 1) // m) * m


# --------------------------- Pallas kernel ---------------------------------
def chain_kernel(x_ref, w1_ref, b1_ref, w2_ref, b2_ref, w3_ref, b3_ref, o_ref):
    """Fused forward: 3 MXU matmuls (bf16 in, f32 acc) + f32 bias-add + ReLU."""
    x = x_ref[...].astype(jnp.bfloat16)                               # (TM, IN)
    h = jnp.dot(x, w1_ref[...],
                preferred_element_type=jnp.float32) + b1_ref[...]     # linear1
    h = jnp.maximum(h, 0.0)                                           # (TM, HID)
    h = jnp.dot(h.astype(jnp.bfloat16), w2_ref[...],
                preferred_element_type=jnp.float32) + b2_ref[...]     # linear2
    h = jnp.maximum(h, 0.0)                                           # (TM, HID)
    o_ref[...] = jnp.dot(h.astype(jnp.bfloat16), w3_ref[...],
                         preferred_element_type=jnp.float32) + b3_ref[...]  # linear3


# ------------------- one-time parameter folding (init time) -----------------
def prepare_params(params):
    """Torch-layout f32 params -> kernel-layout device arrays (done once)."""
    W1, B1, W2, B2, W3, B3 = params                    # torch Linear: (out, in) + (out,)
    w1k = jnp.asarray(W1).T.astype(jnp.bfloat16)       # (IN, HID)   bf16
    b1k = jnp.asarray(B1, jnp.float32)[None, :]        # (1, HID)    f32
    w2k = jnp.asarray(W2).T.astype(jnp.bfloat16)       # (HID, HID)  bf16
    b2k = jnp.asarray(B2, jnp.float32)[None, :]        # (1, HID)    f32
    # zero-pad the tiny output dim to a full 128-lane slab for unmasked stores
    w3k = (jnp.zeros((HID, OUT_PAD), jnp.float32)
           .at[:, :OUT].set(jnp.asarray(W3).T)).astype(jnp.bfloat16)  # (HID, 128) bf16
    b3k = jnp.zeros((1, OUT_PAD), jnp.float32).at[:, :OUT].set(jnp.asarray(B3))
    return (w1k, b1k, w2k, b2k, w3k, b3k)


# ------------------------------- forward ------------------------------------
@jax.jit
def chain_forward(x, folded):
    """x: (B, IN) float32. folded: output of prepare_params (device arrays)."""
    w1k, b1k, w2k, b2k, w3k, b3k = folded
    B = x.shape[0]

    # Batch tile: fill the MXU when batch is large; minimal sublane padding
    # when it is tiny (latency path).
    TM = 256 if B >= 256 else _round_up(max(B, 1), 8)
    bp = _round_up(B, TM)
    if bp != B:
        x = jnp.pad(x, ((0, bp - B), (0, 0)))          # zero rows, sliced off below
    grid = (bp // TM,)

    flops = 2 * bp * (IN * HID + HID * HID + HID * OUT_PAD)
    bytes_accessed = (
        2 * (IN * HID + HID * HID + HID * OUT_PAD)     # bf16 weights
        + 4 * (HID + HID + OUT_PAD)                    # f32 biases
        + 4 * bp * IN + 4 * bp * OUT_PAD               # x in / out
    )

    const = lambda i: (0, 0)                            # weights stay VMEM-resident
    out_pad = pl.pallas_call(
        chain_kernel,
        out_shape=jax.ShapeDtypeStruct((bp, OUT_PAD), jnp.float32),
        grid=grid,
        in_specs=[
            pl.BlockSpec((TM, IN), lambda i: (i, 0)),   # x: blocked over batch
            pl.BlockSpec((IN, HID), const),             # w1
            pl.BlockSpec((1, HID), const),              # b1
            pl.BlockSpec((HID, HID), const),            # w2
            pl.BlockSpec((1, HID), const),              # b2
            pl.BlockSpec((HID, OUT_PAD), const),        # w3 (lane-padded)
            pl.BlockSpec((1, OUT_PAD), const),          # b3 (lane-padded)
        ],
        out_specs=pl.BlockSpec((TM, OUT_PAD), lambda i: (i, 0)),
        compiler_params=pltpu.CompilerParams(
            dimension_semantics=("parallel",)),         # v7x megacore; no-op on v5e/v6e
        cost_estimate=pl.CostEstimate(
            flops=flops, transcendentals=0, bytes_accessed=bytes_accessed),
    )(x, w1k, b1k, w2k, b2k, w3k, b3k)
    return out_pad[:B, :OUT]


# ---------------------------- pure-JAX reference ----------------------------
def chain_reference(x, params):
    W1, B1, W2, B2, W3, B3 = params
    h = jnp.maximum(x @ W1.T + B1, 0.0)
    h = jnp.maximum(h @ W2.T + B2, 0.0)
    return h @ W3.T + B3


def init_params(key):
    """Deterministic init matching torch.nn.Linear shapes (uniform +-1/sqrt(fan_in))."""
    ks = jax.random.split(key, 6)
    def u(k, shape, fan_in):
        b = 1.0 / np.sqrt(fan_in)
        return jax.random.uniform(k, shape, jnp.float32, -b, b)
    W1 = u(ks[0], (HID, IN), IN)
    B1 = u(ks[1], (HID,), IN)
    W2 = u(ks[2], (HID, HID), HID)
    B2 = u(ks[3], (HID,), HID)
    W3 = u(ks[4], (OUT, HID), HID)
    B3 = u(ks[5], (OUT,), HID)
    return (W1, B1, W2, B2, W3, B3)


if __name__ == "__main__":
    root = jax.random.PRNGKey(0)
    kx, kp = jax.random.split(root)
    x = jax.random.uniform(kx, (BATCH, IN), jnp.float32)
    params = init_params(kp)

    folded = prepare_params(params)            # one-time, off the forward path
    out = chain_forward(x, folded)
    out = jax.block_until_ready(out)

    ref = jax.block_until_ready(chain_reference(x, params))
    # bf16 weights / bf16 MXU inputs with f32 accumulation -> looser tolerance
    np.testing.assert_allclose(np.asarray(out), np.asarray(ref), rtol=2e-2, atol=2e-2)
    assert out.shape == (BATCH, OUT)
    print("KERNEL_OK")
</pallas_src>

<mosaic_0001>
module attributes {stable_mosaic.version = 11 : i64} {
  func.func @chain_kernel(%arg0: i32, %arg1: memref<8x128xf32, #tpu.memory_space<vmem>>, %arg2: memref<128x256xbf16, #tpu.memory_space<vmem>>, %arg3: memref<1x256xf32, #tpu.memory_space<vmem>>, %arg4: memref<256x256xbf16, #tpu.memory_space<vmem>>, %arg5: memref<1x256xf32, #tpu.memory_space<vmem>>, %arg6: memref<256x128xbf16, #tpu.memory_space<vmem>>, %arg7: memref<1x128xf32, #tpu.memory_space<vmem>>, %arg8: memref<8x128xf32, #tpu.memory_space<vmem>>) attributes {dimension_semantics = [#tpu.dimension_semantics<parallel>], iteration_bounds = array<i64: 1>, scalar_prefetch = 0 : i64, scratch_operands = 0 : i64, tpu.core_type = #tpu.core_type<tc>, window_params = [{transform_indices = @transform_0, window_bounds = array<i64: 8, 128>}, {pipeline_mode = #tpu.pipeline_mode<synchronous>, transform_indices = @transform_1, window_bounds = array<i64: 128, 256>}, {pipeline_mode = #tpu.pipeline_mode<synchronous>, transform_indices = @transform_2, window_bounds = array<i64: 1, 256>}, {pipeline_mode = #tpu.pipeline_mode<synchronous>, transform_indices = @transform_3, window_bounds = array<i64: 256, 256>}, {pipeline_mode = #tpu.pipeline_mode<synchronous>, transform_indices = @transform_4, window_bounds = array<i64: 1, 256>}, {pipeline_mode = #tpu.pipeline_mode<synchronous>, transform_indices = @transform_5, window_bounds = array<i64: 256, 128>}, {pipeline_mode = #tpu.pipeline_mode<synchronous>, transform_indices = @transform_6, window_bounds = array<i64: 1, 128>}, {transform_indices = @transform_7, window_bounds = array<i64: 8, 128>}]} {
    %c0 = arith.constant 0 : index
    %c0_0 = arith.constant 0 : index
    %0 = vector.load %arg1[%c0, %c0_0] : memref<8x128xf32, #tpu.memory_space<vmem>>, vector<8x128xf32>
    %1 = arith.truncf %0 : vector<8x128xf32> to vector<8x128xbf16>
    %c0_1 = arith.constant 0 : index
    %c0_2 = arith.constant 0 : index
    %2 = vector.load %arg2[%c0_1, %c0_2] : memref<128x256xbf16, #tpu.memory_space<vmem>>, vector<128x256xbf16>
    %cst = arith.constant dense<0.000000e+00> : vector<8x256xf32>
    %3 = tpu.matmul %1, %2, %cst {dimension_numbers = #tpu.dot_dimension_numbers<[1], [0], [0], [1], [0, 0, 1, 1], [], []>} : vector<8x128xbf16>, vector<128x256xbf16>, vector<8x256xf32> -> vector<8x256xf32>
    %c0_3 = arith.constant 0 : index
    %c0_4 = arith.constant 0 : index
    %4 = vector.load %arg3[%c0_3, %c0_4] : memref<1x256xf32, #tpu.memory_space<vmem>>, vector<1x256xf32>
    %5 = vector.broadcast %4 : vector<1x256xf32> to vector<8x256xf32>
    %6 = arith.addf %3, %5 : vector<8x256xf32>
    %cst_5 = arith.constant 0.000000e+00 : f32
    %7 = vector.broadcast %cst_5 : f32 to vector<8x256xf32>
    %8 = arith.maximumf %6, %7 : vector<8x256xf32>
    %9 = arith.truncf %8 : vector<8x256xf32> to vector<8x256xbf16>
    %c0_6 = arith.constant 0 : index
    %c0_7 = arith.constant 0 : index
    %10 = vector.load %arg4[%c0_6, %c0_7] : memref<256x256xbf16, #tpu.memory_space<vmem>>, vector<256x256xbf16>
    %cst_8 = arith.constant dense<0.000000e+00> : vector<8x256xf32>
    %11 = tpu.matmul %9, %10, %cst_8 {dimension_numbers = #tpu.dot_dimension_numbers<[1], [0], [0], [1], [0, 0, 1, 1], [], []>} : vector<8x256xbf16>, vector<256x256xbf16>, vector<8x256xf32> -> vector<8x256xf32>
    %c0_9 = arith.constant 0 : index
    %c0_10 = arith.constant 0 : index
    %12 = vector.load %arg5[%c0_9, %c0_10] : memref<1x256xf32, #tpu.memory_space<vmem>>, vector<1x256xf32>
    %13 = vector.broadcast %12 : vector<1x256xf32> to vector<8x256xf32>
    %14 = arith.addf %11, %13 : vector<8x256xf32>
    %cst_11 = arith.constant 0.000000e+00 : f32
    %15 = vector.broadcast %cst_11 : f32 to vector<8x256xf32>
    %16 = arith.maximumf %14, %15 : vector<8x256xf32>
    %17 = arith.truncf %16 : vector<8x256xf32> to vector<8x256xbf16>
    %c0_12 = arith.constant 0 : index
    %c0_13 = arith.constant 0 : index
    %18 = vector.load %arg6[%c0_12, %c0_13] : memref<256x128xbf16, #tpu.memory_space<vmem>>, vector<256x128xbf16>
    %cst_14 = arith.constant dense<0.000000e+00> : vector<8x128xf32>
    %19 = tpu.matmul %17, %18, %cst_14 {dimension_numbers = #tpu.dot_dimension_numbers<[1], [0], [0], [1], [0, 0, 1, 1], [], []>} : vector<8x256xbf16>, vector<256x128xbf16>, vector<8x128xf32> -> vector<8x128xf32>
    %c0_15 = arith.constant 0 : index
    %c0_16 = arith.constant 0 : index
    %20 = vector.load %arg7[%c0_15, %c0_16] : memref<1x128xf32, #tpu.memory_space<vmem>>, vector<1x128xf32>
    %21 = vector.broadcast %20 : vector<1x128xf32> to vector<8x128xf32>
    %22 = arith.addf %19, %21 : vector<8x128xf32>
    %c0_17 = arith.constant 0 : index
    %c0_18 = arith.constant 0 : index
    %23 = vector.load %arg8[%c0_17, %c0_18] : memref<8x128xf32, #tpu.memory_space<vmem>>, vector<8x128xf32>
    tpu.vector_store %arg8[%c0_17, %c0_18], %22 {strides = array<i32>} : memref<8x128xf32, #tpu.memory_space<vmem>>, vector<8x128xf32>,
    return
  }
  func.func @transform_0(%arg0: i32) -> (i32, i32) {
    %c0_i32 = arith.constant 0 : i32
    %c0_i32_0 = arith.constant 0 : i32
    return %arg0, %c0_i32 : i32, i32
  }
  func.func @transform_1(%arg0: i32) -> (i32, i32) {
    %c0_i32 = arith.constant 0 : i32
    %c0_i32_0 = arith.constant 0 : i32
    %c0_i32_1 = arith.constant 0 : i32
    return %c0_i32, %c0_i32_0 : i32, i32
  }
  func.func @transform_2(%arg0: i32) -> (i32, i32) {
    %c0_i32 = arith.constant 0 : i32
    %c0_i32_0 = arith.constant 0 : i32
    %c0_i32_1 = arith.constant 0 : i32
    return %c0_i32, %c0_i32_0 : i32, i32
  }
  func.func @transform_3(%arg0: i32) -> (i32, i32) {
    %c0_i32 = arith.constant 0 : i32
    %c0_i32_0 = arith.constant 0 : i32
    %c0_i32_1 = arith.constant 0 : i32
    return %c0_i32, %c0_i32_0 : i32, i32
  }
  func.func @transform_4(%arg0: i32) -> (i32, i32) {
    %c0_i32 = arith.constant 0 : i32
    %c0_i32_0 = arith.constant 0 : i32
    %c0_i32_1 = arith.constant 0 : i32
    return %c0_i32, %c0_i32_0 : i32, i32
  }
  func.func @transform_5(%arg0: i32) -> (i32, i32) {
    %c0_i32 = arith.constant 0 : i32
    %c0_i32_0 = arith.constant 0 : i32
    %c0_i32_1 = arith.constant 0 : i32
    return %c0_i32, %c0_i32_0 : i32, i32
  }
  func.func @transform_6(%arg0: i32) -> (i32, i32) {
    %c0_i32 = arith.constant 0 : i32
    %c0_i32_0 = arith.constant 0 : i32
    %c0_i32_1 = arith.constant 0 : i32
    return %c0_i32, %c0_i32_0 : i32, i32
  }
  func.func @transform_7(%arg0: i32) -> (i32, i32) {
    %c0_i32 = arith.constant 0 : i32
    %c0_i32_0 = arith.constant 0 : i32
    return %arg0, %c0_i32 : i32, i32
  }
}

</mosaic_0001>

<bundles_post_ra>
// kernel: chain_forward.1
= control target key start
LH: loop header
LB: loop body
LE: loop exit
PB: predicated region body
PF: predicated region fallthrough
CT: control target
= control target key end

     0   :  { %12 = vsyncpa [#allocation3], 0  ;;  %s973_s0 = inlined_call_operand.vmem [shape: f32[8,128], index: 0, kind: input, shape index: {}]   ;;  %s974_s1 = inlined_call_operand.hbm [shape: bf16[128,256], index: 1, kind: input, shape index: {}]   ;;  %s975_s2 = inlined_call_operand.vmem [shape: f32[1,256], index: 2, kind: input, shape index: {}]   ;;  %s976_s3 = inlined_call_operand.hbm [shape: bf16[256,256], index: 3, kind: input, shape index: {}]   ;;  %s977_s4 = inlined_call_operand.vmem [shape: f32[1,256], index: 4, kind: input, shape index: {}]   ;;  %s978_s5 = inlined_call_operand.hbm [shape: bf16[256,128], index: 5, kind: input, shape index: {}]   ;;  %s979_s6 = inlined_call_operand.vmem [shape: f32[1,128], index: 6, kind: input, shape index: {}]   ;;  %s980_s7 = inlined_call_operand.vmem [shape: f32[8,128], index: 7, kind: output, shape index: {}]  }
   0x1   :  { %13 = vsyncpa [#allocation5], 0  ;;  %s901_s24 = smov [#allocation4]   ;;  %s902_s26 = smov [#allocation2]  }
   0x2   :  { %s35_s25 = sshll.u32 %s901_s24, 4  ;;  %s21_s27 = sshll.u32 %s902_s26, 4  ;;  %s36_s25 = int_to_ptr.vmem [resolvable:$true] %s35_s25  ;;  %s22_s27 = int_to_ptr.vmem [resolvable:$true] %s21_s27 }
   0x3   :  { %s845_s28 = scalar_lea.vmem %s36_s25, 4096  ;;  %p850_p1 = scmp.lt.s32.totalorder %s36_s25, %s36_s25 }
   0x4   :  { %p846_p0 = scmp.ne.s32.totalorder %s36_s25, %s845_s28  ;;  %p851_p2 = scmp.lt.s32.totalorder %s845_s28, %s845_s28 }
   0x6   :  { %p852_p3 = por %p851_p2, %p850_p1 }
   0x8   :  { %p853_p4 = pnand %p852_p3, %p846_p0 }
   0xa   :  { %856 = shalt.err (!%p853_p4)
}
   0xb   :  { %s903_s29 = smov 128   ;;  %s904_s30 = smov 8  }
   0xc   :  { %41 = dma.hbm_to_vmem [thread:$0]  %s976_s3, 4096, %s36_s25, [#allocation5], %s903_s29, %s903_s29, %s904_s30  }
   0xd   :  { %s865_s10 = scalar_lea.vmem %s22_s27, 2048  ;;  %p870_p6 = scmp.lt.s32.totalorder %s22_s27, %s22_s27 }
   0xe   :  { %p866_p5 = scmp.ne.s32.totalorder %s22_s27, %s865_s10  ;;  %p871_p7 = scmp.lt.s32.totalorder %s865_s10, %s865_s10 }
  0x10   :  { %p872_p8 = por %p871_p7, %p870_p6 }
  0x12   :  { %p873_p9 = pnand %p872_p8, %p866_p5 }
  0x14   :  { %876 = shalt.err (!%p873_p9)
}
  0x15   :  { %27 = dma.hbm_to_vmem [thread:$0]  %s974_s1, 2048, %s22_s27, [#allocation3], %s903_s29, %s903_s29, %s904_s30  }
  0x16   :  { %s905_s13 = smov [#allocation6]  }
  0x17   :  { %s49_s14 = sshll.u32 %s905_s13, 4  ;;  %s50_s14 = int_to_ptr.vmem [resolvable:$true] %s49_s14 }
  0x18   :  { %s885_s15 = scalar_lea.vmem %s50_s14, 2048  ;;  %p890_p11 = scmp.lt.s32.totalorder %s50_s14, %s50_s14 }
  0x19   :  { %p886_p10 = scmp.ne.s32.totalorder %s50_s14, %s885_s15  ;;  %p891_p12 = scmp.lt.s32.totalorder %s885_s15, %s885_s15 }
  0x1b   :  { %p892_p13 = por %p891_p12, %p890_p11 }
  0x1d   :  { %p893_p0 = pnand %p892_p13, %p886_p10 }
  0x1f   :  { %896 = shalt.err (!%p893_p0)
}
  0x20   :  { %s906_s3 = smov 64   ;;  %s907_s16 = smov 4  }
  0x21   :  { %55 = dma.hbm_to_vmem [thread:$0]  %s978_s5, 2048, %s50_s14, [#allocation5], %s906_s3, %s906_s3, %s907_s16  }
  0x22   :  { %897 = dma.done.wait [#allocation3], 2048  }
  0x23   :  { %898 = vsyncadd [#allocation3], 4294965248 }
  0x24   :  { %899 = dma.done.wait [#allocation5], 6144  }
  0x25   :  { %900 = vsyncadd [#allocation5], 4294961152  ;;  %v908_v0 = vmov 0   ;;  %v749_v1 = vld [vmem:[#allocation2 + $0x74] ss:$8 sps:$4 sm:$0xff]   ;;  %v68_v26 = vld [vmem:[%s973_s0] sm:$0xff]  ;;  %v88_v63 = vlaneseq }
  0x26   :  { %210 = vmatprep.mubr.bf16.mxu0 %v908_v0  ;;  %v751_v2 = vld [vmem:[#allocation2 + $0x70] ss:$8 sps:$4 sm:$0xff]   ;;  %178 = vmatprep.subr.bf16.mxu0 %v749_v1  ;;  %v752_v3 = vld [vmem:[#allocation2 + $0x64] ss:$8 sps:$4 sm:$0xff]   ;;  %v754_v4 = vld [vmem:[#allocation2 + $0x60] ss:$8 sps:$4 sm:$0xff]   ;;  %v69_v31 = vpack.c.bf16 %v68_v26, %v68_v26 }
  0x27   :  { %179 = vmatpush1.bf16.msra.mxu0 %v751_v2  ;;  %v755_v5 = vld [vmem:[#allocation2 + $0x54] ss:$8 sps:$4 sm:$0xff]   ;;  %v757_v6 = vld [vmem:[#allocation2 + $0x50] ss:$8 sps:$4 sm:$0xff]   ;;  %v758_v7 = vld [vmem:[#allocation2 + $0x44] ss:$8 sps:$4 sm:$0xff]  }
  0x28   :  { %180 = vmatprep.subr.bf16.mxu0 %v752_v3  ;;  %v760_v8 = vld [vmem:[#allocation2 + $0x40] ss:$8 sps:$4 sm:$0xff]   ;;  %v761_v9 = vld [vmem:[#allocation2 + $0x34] ss:$8 sps:$4 sm:$0xff]   ;;  %v775_v11 = vld [vmem:[#allocation4 + $0x70] ss:$8 sps:$4 sm:$0xff]  }
  0x29   :  { %v773_v10 = vld [vmem:[#allocation4 + $0x74] ss:$8 sps:$4 sm:$0xff]   ;;  %v776_v12 = vld [vmem:[#allocation4 + $0x64] ss:$8 sps:$4 sm:$0xff]   ;;  %v763_v13 = vld [vmem:[#allocation2 + $0x30] ss:$8 sps:$4 sm:$0xff]  }
  0x2a   :  { %427 = vmatprep.subr.bf16.mxu1 %v773_v10  ;;  %v778_v14 = vld [vmem:[#allocation4 + $0x60] ss:$8 sps:$4 sm:$0xff]   ;;  %v779_v15 = vld [vmem:[#allocation4 + $0x54] ss:$8 sps:$4 sm:$0xff]   ;;  %v764_v16 = vld [vmem:[#allocation2 + $0x24] ss:$8 sps:$4 sm:$0xff]  }
  0x2b   :  { %181 = vmatpush1.bf16.msra.mxu0 %v754_v4  ;;  %428 = vmatpush1.bf16.msra.mxu1 %v775_v11  ;;  %v766_v17 = vld [vmem:[#allocation2 + $0x20] ss:$8 sps:$4 sm:$0xff]   ;;  %v781_v18 = vld [vmem:[#allocation4 + $0x50] ss:$8 sps:$4 sm:$0xff]   ;;  %v782_v19 = vld [vmem:[#allocation4 + $0x44] ss:$8 sps:$4 sm:$0xff]  }
  0x2c   :  { %182 = vmatprep.subr.bf16.mxu0 %v755_v5  ;;  %429 = vmatprep.subr.bf16.mxu1 %v776_v12  ;;  %v767_v20 = vld [vmem:[#allocation2 + $0x14] ss:$8 sps:$4 sm:$0xff]   ;;  %v769_v21 = vld [vmem:[#allocation2 + $0x10] ss:$8 sps:$4 sm:$0xff]   ;;  %v784_v22 = vld [vmem:[#allocation4 + $0x40] ss:$8 sps:$4 sm:$0xff]  }
  0x2d   :  { %v785_v23 = vld [vmem:[#allocation4 + $0x34] ss:$8 sps:$4 sm:$0xff]   ;;  %v770_v24 = vld [vmem:[#allocation2 + $0x4] ss:$8 sps:$4 sm:$0xff]   ;;  %v772_v25 = vld [vmem:[#allocation2] ss:$8 sps:$4 sm:$0xff]  }
  0x2e   :  { %v787_v27 = vld [vmem:[#allocation4 + $0x30] ss:$8 sps:$4 sm:$0xff]   ;;  %v788_v28 = vld [vmem:[#allocation4 + $0x24] ss:$8 sps:$4 sm:$0xff]   ;;  %v790_v29 = vld [vmem:[#allocation4 + $0x20] ss:$8 sps:$4 sm:$0xff]  }
  0x2f   :  { %183 = vmatpush1.bf16.msra.mxu0 %v757_v6  ;;  %430 = vmatpush1.bf16.msra.mxu1 %v778_v14  ;;  %v791_v30 = vld [vmem:[#allocation4 + $0x14] ss:$8 sps:$4 sm:$0xff]   ;;  %v793_v32 = vld [vmem:[#allocation4 + $0x10] ss:$8 sps:$4 sm:$0xff]   ;;  %v794_v33 = vld [vmem:[#allocation4 + $0x4] ss:$8 sps:$4 sm:$0xff]  }
  0x30   :  { %184 = vmatprep.subr.bf16.mxu0 %v758_v7  ;;  %431 = vmatprep.subr.bf16.mxu1 %v779_v15  ;;  %v796_v34 = vld [vmem:[#allocation4] ss:$8 sps:$4 sm:$0xff]   ;;  %v797_v35 = vld [vmem:[#allocation4 + $0xf4] ss:$8 sps:$4 sm:$0xff]   ;;  %v799_v36 = vld [vmem:[#allocation4 + $0xf0] ss:$8 sps:$4 sm:$0xff]  }
  0x31   :  { %v800_v37 = vld [vmem:[#allocation4 + $0xe4] ss:$8 sps:$4 sm:$0xff]   ;;  %v802_v38 = vld [vmem:[#allocation4 + $0xe0] ss:$8 sps:$4 sm:$0xff]   ;;  %v803_v39 = vld [vmem:[#allocation4 + $0xd4] ss:$8 sps:$4 sm:$0xff]  }
  0x32   :  { %v805_v40 = vld [vmem:[#allocation4 + $0xd0] ss:$8 sps:$4 sm:$0xff]   ;;  %v806_v41 = vld [vmem:[#allocation4 + $0xc4] ss:$8 sps:$4 sm:$0xff]   ;;  %v808_v42 = vld [vmem:[#allocation4 + $0xc0] ss:$8 sps:$4 sm:$0xff]  }
  0x33   :  { %185 = vmatpush1.bf16.msra.mxu0 %v760_v8  ;;  %432 = vmatpush1.bf16.msra.mxu1 %v781_v18  ;;  %v809_v43 = vld [vmem:[#allocation4 + $0xb4] ss:$8 sps:$4 sm:$0xff]   ;;  %v811_v44 = vld [vmem:[#allocation4 + $0xb0] ss:$8 sps:$4 sm:$0xff]   ;;  %v812_v45 = vld [vmem:[#allocation4 + $0xa4] ss:$8 sps:$4 sm:$0xff]  }
  0x34   :  { %186 = vmatprep.subr.bf16.mxu0 %v761_v9  ;;  %433 = vmatprep.subr.bf16.mxu1 %v782_v19  ;;  %v814_v46 = vld [vmem:[#allocation4 + $0xa0] ss:$8 sps:$4 sm:$0xff]   ;;  %v815_v47 = vld [vmem:[#allocation4 + $0x94] ss:$8 sps:$4 sm:$0xff]   ;;  %v817_v48 = vld [vmem:[#allocation4 + $0x90] ss:$8 sps:$4 sm:$0xff]  }
  0x35   :  { %v818_v49 = vld [vmem:[#allocation4 + $0x84] ss:$8 sps:$4 sm:$0xff]   ;;  %v820_v50 = vld [vmem:[#allocation4 + $0x80] ss:$8 sps:$4 sm:$0xff]   ;;  %v821_v51 = vld [vmem:[#allocation6 + $0x78] sm:$0xff]   ;;  %v89_v0 = vshrl.u32 %v88_v63, 7 }
  0x36   :  { %v822_v52 = vld [vmem:[#allocation6 + $0x38] sm:$0xff]   ;;  %v823_v53 = vld [vmem:[#allocation6 + $0x70] sm:$0xff]   ;;  %v825_v55 = vld [vmem:[#allocation6 + $0x68] sm:$0xff]  }
  0x37   :  { %187 = vmatpush1.bf16.msra.mxu0 %v763_v13  ;;  %434 = vmatpush1.bf16.msra.mxu1 %v784_v22  ;;  %v824_v54 = vld [vmem:[#allocation6 + $0x30] sm:$0xff]   ;;  %v826_v56 = vld [vmem:[#allocation6 + $0x28] sm:$0xff]   ;;  %v827_v57 = vld [vmem:[#allocation6 + $0x60] sm:$0xff]   ;;  %v90_v1 = vsub.s32 0, %v89_v0  ;;  %v94_v3 = vsub.s32 1, %v89_v0 }
  0x38   :  { %188 = vmatprep.subr.bf16.mxu0 %v764_v16  ;;  %435 = vmatprep.subr.bf16.mxu1 %v785_v23  ;;  %v828_v58 = vld [vmem:[#allocation6 + $0x20] sm:$0xff]   ;;  %v829_v59 = vld [vmem:[#allocation6 + $0x58] sm:$0xff]   ;;  %v831_v61 = vld [vmem:[#allocation6 + $0x50] sm:$0xff]  }
  0x39   :  { %v830_v60 = vld [vmem:[#allocation6 + $0x18] sm:$0xff]   ;;  %v832_v62 = vld [vmem:[#allocation6 + $0x10] sm:$0xff]   ;;  %v86_v2 = vld [vmem:[%s975_s2] sm:$0x3] }
  0x3a   :  { %v91_v4 = vrot.slane %v86_v2, %v90_v1  ;;  %v95_v5 = vrot.slane %v86_v2, %v94_v3  ;;  %v833_v16 = vld [vmem:[#allocation6 + $0x48] sm:$0xff]   ;;  %v835_v18 = vld [vmem:[#allocation6 + $0x40] sm:$0xff]  }
  0x3b   :  { %189 = vmatpush1.bf16.msra.mxu0 %v766_v17  ;;  %436 = vmatpush1.bf16.msra.mxu1 %v787_v27  ;;  %v834_v17 = vld [vmem:[#allocation6 + $0x8] sm:$0xff]   ;;  %v836_v19 = vld [vmem:[#allocation6] sm:$0xff]  }
  0x3c   :  { %190 = vmatprep.subr.bf16.mxu0 %v767_v20  ;;  %437 = vmatprep.subr.bf16.mxu1 %v788_v28  ;;  %v255_v20 = vld [vmem:[%s977_s4] sm:$0x3] }
  0x3d   :  { %v264_v22 = vrot.slane %v255_v20, %v94_v3 }
  0x3f   :  { %191 = vmatpush1.bf16.msra.mxu0 %v769_v21  ;;  %438 = vmatpush1.bf16.msra.mxu1 %v790_v29  ;;  %v260_v21 = vrot.slane %v255_v20, %v90_v1 }
  0x40   :  { %192 = vmatprep.subr.bf16.mxu0 %v770_v24  ;;  %439 = vmatprep.subr.bf16.mxu1 %v791_v30 }
  0x43   :  { %193 = vmatpush1.bf16.msra.mxu0 %v772_v25  ;;  %440 = vmatpush1.bf16.msra.mxu1 %v793_v32 }
  0x44   :  { %441 = vmatprep.subr.bf16.mxu1 %v794_v33  ;;  %719 = vmatprep.subr.bf16.mxu0 %v821_v51 }
  0x46   :  { %211 = vmatmul.mubr.bf16.vlgmr.msra.gmra.mxu0 %v69_v31 }
  0x47   :  { %442 = vmatpush1.bf16.msra.mxu1 %v796_v34  ;;  %720 = vmatpush3.bf16.msra.mxu0 %v822_v52  ;;  %v702_v34 = vld [vmem:[%s979_s6] ss:$0 sm:$0xff] }
  0x48   :  { %443 = vmatprep.subr.bf16.mxu1 %v797_v35  ;;  %721 = vmatprep.subr.bf16.mxu0 %v823_v53 }
  0x4b   :  { %444 = vmatpush2.bf16.msra.mxu1 %v799_v36  ;;  %722 = vmatpush3.bf16.msra.mxu0 %v824_v54 }
  0x4c   :  { %445 = vmatprep.subr.bf16.mxu1 %v800_v37  ;;  %723 = vmatprep.subr.bf16.mxu0 %v825_v55 }
  0x4f   :  { %446 = vmatpush2.bf16.msra.mxu1 %v802_v38  ;;  %724 = vmatpush3.bf16.msra.mxu0 %v826_v56 }
  0x50   :  { %447 = vmatprep.subr.bf16.mxu1 %v803_v39  ;;  %725 = vmatprep.subr.bf16.mxu0 %v827_v57 }
  0x53   :  { %448 = vmatpush2.bf16.msra.mxu1 %v805_v40  ;;  %726 = vmatpush3.bf16.msra.mxu0 %v828_v58 }
  0x54   :  { %449 = vmatprep.subr.bf16.mxu1 %v806_v41  ;;  %727 = vmatprep.subr.bf16.mxu0 %v829_v59 }
  0x57   :  { %450 = vmatpush2.bf16.msra.mxu1 %v808_v42  ;;  %728 = vmatpush3.bf16.msra.mxu0 %v830_v60 }
  0x58   :  { %451 = vmatprep.subr.bf16.mxu1 %v809_v43  ;;  %729 = vmatprep.subr.bf16.mxu0 %v831_v61 }
  0x5b   :  { %452 = vmatpush2.bf16.msra.mxu1 %v811_v44  ;;  %730 = vmatpush3.bf16.msra.mxu0 %v832_v62 }
  0x5c   :  { %453 = vmatprep.subr.bf16.mxu1 %v812_v45  ;;  %731 = vmatprep.subr.bf16.mxu0 %v833_v16 }
  0x5f   :  { %454 = vmatpush2.bf16.msra.mxu1 %v814_v46  ;;  %732 = vmatpush3.bf16.msra.mxu0 %v834_v17 }
  0x60   :  { %455 = vmatprep.subr.bf16.mxu1 %v815_v47  ;;  %733 = vmatprep.subr.bf16.mxu0 %v835_v18 }
  0x63   :  { %456 = vmatpush2.bf16.msra.mxu1 %v817_v48  ;;  %734 = vmatpush3.bf16.msra.mxu0 %v836_v19 }
  0x64   :  { %457 = vmatprep.subr.bf16.mxu1 %v818_v49 }
  0x67   :  { %458 = vmatpush2.bf16.msra.mxu1 %v820_v50 }
 0x106   :  { %v212_v6 = vpop.f32.mrf.mxu0 }
 0x107   :  { %v213_v7 = vadd.f32 %v212_v6, %v91_v4 }
 0x108   :  { %v214_v8 = vpop.f32.mrf.mxu0 }
 0x109   :  { %v215_v9 = vadd.f32 %v214_v8, %v95_v5  ;;  %v219_v10 = vmax.f32 %v213_v7, 0.0 }
 0x10a   :  { %v216_v11 = vpop.f32.mrf.mxu0 }
 0x10b   :  { %v220_v12 = vmax.f32 %v215_v9, 0.0  ;;  %v221_v15 = vpack.c.bf16 %v219_v10, %v219_v10 }
 0x10c   :  { %v217_v13 = vpop.f32.mrf.mxu0 }
 0x10d   :  { %v222_v14 = vpack.c.bf16 %v220_v12, %v220_v12 }
 0x10f   :  { %459 = vmatprep.mubr.bf16.mxu1 %v222_v14 }
 0x110   :  { %460 = vmatmul.mubr.bf16.vlgmr.msra.gmra.mxu1 %v221_v15 }
 0x1d0   :  { %v461_v23 = vpop.f32.mrf.mxu1 }
 0x1d1   :  { %v462_v24 = vadd.f32 %v461_v23, %v260_v21 }
 0x1d2   :  { %v463_v25 = vpop.f32.mrf.mxu1 }
 0x1d3   :  { %v464_v26 = vadd.f32 %v463_v25, %v264_v22  ;;  %v468_v27 = vmax.f32 %v462_v24, 0.0 }
 0x1d4   :  { %v465_v28 = vpop.f32.mrf.mxu1 }
 0x1d5   :  { %v469_v29 = vmax.f32 %v464_v26, 0.0  ;;  %v470_v32 = vpack.c.bf16 %v468_v27, %v468_v27 }
 0x1d6   :  { %v466_v30 = vpop.f32.mrf.mxu1 }
 0x1d7   :  { %v471_v31 = vpack.c.bf16 %v469_v29, %v469_v29 }
 0x1d9   :  { %639 = vmatprep.mubr.bf16.mxu0 %v471_v31 }
 0x1da   :  { %640 = vmatmul.mubr.bf16.vlgmr.msra.gmra.mxu0 %v470_v32 }
 0x29a   :  { %v735_v33 = vpop.f32.mrf.mxu0 }
 0x29c   :  { %v736_v35 = vpop.f32.mrf.mxu0 }
 0x29d   :  { %v737_v36 = vadd.f32 %v736_v35, %v735_v33 }
 0x29e   :  { %v738_v37 = vpop.f32.mrf.mxu0 }
 0x29f   :  { %v642_v38 = vadd.f32 %v737_v36, %v702_v34 }
 0x2a0   :  { %v739_v39 = vpop.f32.mrf.mxu0 }
 0x2a1   :  { %647 = vst [vmem:[%s980_s7] sm:$0xff] %v642_v38 }
 0x2a2   :  { %652 = vsyncpa [#allocation3], 1 }
 0x2a3   :  { %653 = vsyncpa [#allocation5], 1 }

</bundles_post_ra>
